<compile_context>
chip_gen: v6e
topology: v6e:2x2x1
jax: 0.10.0
libtpu: 0.0.40
codegen_flags: <defaults>
</compile_context>

<pallas_src>
import functools

import jax
import jax.numpy as jnp
from jax.experimental import pallas as pl
from jax.experimental.pallas import tpu as pltpu

LANE = 128            # TPU lane width (last-dim vreg axis)
MIB = 1024 * 1024


def _round_up(n, m):
    return ((n + m - 1) // m) * m


def _cdiv(a, b):
    return -(-a // b)


# --------------------------------------------------------------------------- #
# One-time, static hardware / capability queries (cached, never run a kernel)
# --------------------------------------------------------------------------- #
@functools.lru_cache(maxsize=1)
def _chip_profile():
    """(vmem_capacity_bytes, mxu_dim, has_two_tensorcores) for the local chip."""
    kind = ""
    try:
        kind = jax.devices()[0].device_kind.lower()
    except Exception:
        pass
    two_cores = ("v7" in kind) or ("7x" in kind)
    try:
        vmem = int(pltpu.get_tpu_info().vmem_capacity_bytes)
    except Exception:
        vmem = 64 * MIB if two_cores else 128 * MIB
    # v2-v5 generations have 128x128 MXUs; v6e / v7x have 256x256 MXUs.
    small_mxu = any(t in kind for t in ("v2", "v3", "v4", "v5"))
    mxu_dim = 128 if small_mxu else 256
    return vmem, mxu_dim, two_cores


@functools.lru_cache(maxsize=1)
def _single_buffer_supported():
    """Probe whether constant-index blocks accept pipeline_mode=pl.Buffered(1).

    Static only: BlockSpec construction + trace + lower + compile of a tiny
    kernel; nothing is ever executed, so real runtime failures of the actual
    MLP kernel are never masked.
    """
    if not hasattr(pl, "Buffered"):
        return False

    def _probe_kernel(x_ref, w_ref, o_ref):
        o_ref[...] = x_ref[...] + w_ref[...]

    try:
        call = pl.pallas_call(
            _probe_kernel,
            out_shape=jax.ShapeDtypeStruct((16, LANE), jnp.float32),
            grid_spec=pltpu.PrefetchScalarGridSpec(
                num_scalar_prefetch=0,
                grid=(2,),
                in_specs=[
                    pl.BlockSpec((8, LANE), lambda i: (i, 0)),
                    pl.BlockSpec((8, LANE), lambda i: (0, 0),
                                 pipeline_mode=pl.Buffered(1)),
                ],
                out_specs=pl.BlockSpec((8, LANE), lambda i: (i, 0)),
            ),
        )
        a = jax.ShapeDtypeStruct((16, LANE), jnp.float32)
        b = jax.ShapeDtypeStruct((8, LANE), jnp.float32)
        jax.jit(call).lower(a, b).compile()   # AOT only; never executed
        return True
    except Exception:
        return False


# --------------------------------------------------------------------------- #
# Kernel
# --------------------------------------------------------------------------- #
def _mlp_kernel(n_linear, compute_dtype, x_ref, *refs):
    """Fused MLP.  refs = (w0, b0, w1, b1, ..., w_{L-1}, b_{L-1}, out_ref).

    Weights / activations are `compute_dtype` (bf16 by default -> MXU inputs);
    accumulation, bias add and ReLU run in f32.  All feature dims were padded
    to 128 lanes in the wrapper, so padded lanes stay exactly zero through every
    layer and all stores are lane-dense.
    """
    out_ref = refs[-1]
    param_refs = refs[:-1]

    h = x_ref[...]                                       # [bt, in_p] compute_dtype
    for li in range(n_linear):
        w = param_refs[2 * li][...]                      # [in_p, out_p] compute_dtype
        b = param_refs[2 * li + 1][...]                  # [1, out_p] f32
        acc = jnp.dot(h, w, preferred_element_type=jnp.float32) + b
        if li < n_linear - 1:
            # TODO(synk): activation is a constructor argument in the PyTorch
            # module (an arbitrary nn.Module); ReLU is implemented here.
            acc = jnp.maximum(acc, 0.0)
            h = acc.astype(compute_dtype)                # feed next MXU matmul
        else:
            h = acc
    # TODO(synk): for very wide hidden layers (bt*out_p*4 >> 256 KiB) chunk the
    # bias+ReLU+cast per 512-lane N-slab through a VMEM scratch to bound vreg
    # pressure; unnecessary at these widths.
    out_ref[...] = h.astype(out_ref.dtype)


def _build_pallas_call(n_linear, compute_dtype, pbatch, bt, in_p, out_p,
                       param_shapes, out_dtype, single_buffer,
                       cost_estimate, vmem_limit_bytes):
    kernel = functools.partial(_mlp_kernel, n_linear, compute_dtype)
    # Constant block index across the grid: the same block is reused every
    # step, so double-buffering buys nothing -> single buffer when supported.
    const_kwargs = {"pipeline_mode": pl.Buffered(1)} if single_buffer else {}

    in_specs = [pl.BlockSpec((bt, in_p), lambda i: (i, 0))]
    for shp in param_shapes:
        in_specs.append(pl.BlockSpec(shp, lambda i: (0, 0), **const_kwargs))
    out_spec = pl.BlockSpec((bt, out_p), lambda i: (i, 0))

    return pl.pallas_call(
        kernel,
        out_shape=jax.ShapeDtypeStruct((pbatch, out_p), out_dtype),
        grid_spec=pltpu.PrefetchScalarGridSpec(
            num_scalar_prefetch=0,
            grid=(pbatch // bt,),
            in_specs=in_specs,
            out_specs=out_spec,
        ),
        compiler_params=pltpu.CompilerParams(
            dimension_semantics=("parallel",),    # independent batch tiles
            vmem_limit_bytes=vmem_limit_bytes,
        ),
        cost_estimate=cost_estimate,
    )


# --------------------------------------------------------------------------- #
# Wrapper: one-time parameter prep + cached jitted forwards
# --------------------------------------------------------------------------- #
class PallasMLP:
    """Fused Pallas-TPU forward for the PyTorch `NeuralNetwork` MLP."""

    def __init__(self, weights, biases, *, param_dtype=jnp.bfloat16,
                 out_dtype=None, batch_tile=None):
        self.param_dtype = jnp.dtype(param_dtype)
        self.out_dtype = jnp.dtype(param_dtype if out_dtype is None else out_dtype)
        self.n_linear = len(weights)
        self.input_dim = int(weights[0].shape[0])
        self.output_dim = int(weights[-1].shape[1])

        dims = [self.input_dim] + [int(w.shape[1]) for w in weights]
        # Lane-dense padding to 128 everywhere.
        # TODO(synk): optionally pad odd-multiple-of-128 hidden dims to 256 on
        # 256x256-MXU chips when the workload is compute-bound (large batches).
        self.pdims = [_round_up(d, LANE) for d in dims]

        # ---- one-time parameter padding (hoisted out of the forward path) ----
        params = []
        for li, (w, b) in enumerate(zip(weights, biases)):
            w = jnp.asarray(w, jnp.float32)
            b = jnp.asarray(b, jnp.float32).reshape(1, -1)
            wp = jnp.zeros((self.pdims[li], self.pdims[li + 1]), self.param_dtype)
            wp = wp.at[: w.shape[0], : w.shape[1]].set(w.astype(self.param_dtype))
            bp = jnp.zeros((1, self.pdims[li + 1]), jnp.float32)
            bp = bp.at[:, : b.shape[1]].set(b)
            params.extend([wp, bp])
        self.params = tuple(jax.block_until_ready(p) for p in params)

        self._batch_tile = batch_tile
        self._fwd_cache = {}

    def _build_forward(self, batch):
        vmem_cap, mxu_dim, two_cores = _chip_profile()
        in_p, out_p = self.pdims[0], self.pdims[-1]
        single_buffer = _single_buffer_supported()

        # bf16 packs 16 sublanes per vreg; 16 also satisfies the f32 minimum (8).
        batch_align = 16
        target_bt = 256 if mxu_dim >= 256 else 128     # fill MXU rows per chip gen
        if self._batch_tile is not None:
            target_bt = _round_up(self._batch_tile, batch_align)

        pbatch0 = _round_up(batch, batch_align)
        n_tiles = _cdiv(pbatch0, target_bt)
        if two_cores and n_tiles == 1 and pbatch0 >= 2 * 128:
            n_tiles = 2                                # keep both v7x TCs busy
        bt = _round_up(_cdiv(pbatch0, n_tiles), batch_align)
        pbatch = bt * n_tiles

        # ---- VMEM budget: generation-aware cap with Mosaic headroom ----
        buf_factor = 1 if single_buffer else 2
        param_bytes = buf_factor * sum(p.size * p.dtype.itemsize for p in self.params)
        io_bytes = (2 * bt * in_p * self.param_dtype.itemsize
                    + 2 * bt * out_p * self.out_dtype.itemsize)
        act_bytes = bt * max(self.pdims) * (4 + self.param_dtype.itemsize)
        vmem_needed = param_bytes + io_bytes + 3 * act_bytes
        # ~48 MiB on v7x (64 MiB/TC), ~100 MiB on v5e/v6e (128 MiB).
        vmem_hard_cap = max(vmem_cap * 3 // 4, vmem_cap - 28 * MIB, 32 * MIB)
        vmem_limit = int(min(vmem_hard_cap, max(32 * MIB, 2 * vmem_needed)))
        # TODO(synk): if param_bytes alone exceeds ~vmem_hard_cap/2 (very
        # wide/deep nets), switch hidden layers to a layer/K-tiled weight-
        # streaming grid (Buffered(2) weights) instead of VMEM-resident weights.

        flops = 2 * pbatch * sum(self.pdims[i] * self.pdims[i + 1]
                                 for i in range(self.n_linear))
        bytes_accessed = int(pbatch * in_p * self.param_dtype.itemsize
                             + sum(p.size * p.dtype.itemsize for p in self.params)
                             + pbatch * out_p * self.out_dtype.itemsize)
        cost = pl.CostEstimate(flops=int(flops), transcendentals=0,
                               bytes_accessed=bytes_accessed)

        call = _build_pallas_call(
            self.n_linear, self.param_dtype, pbatch, bt, in_p, out_p,
            [p.shape for p in self.params], self.out_dtype, single_buffer,
            cost, vmem_limit)

        input_dim, output_dim = self.input_dim, self.output_dim
        param_dtype = self.param_dtype

        def fwd(x, *params):
            xp = jnp.pad(x.astype(param_dtype),
                         ((0, pbatch - x.shape[0]), (0, in_p - input_dim)))
            yp = call(xp, *params)
            return yp[:x.shape[0], :output_dim]

        return jax.jit(fwd)

    def __call__(self, x):
        batch = int(x.shape[0])
        fwd = self._fwd_cache.get(batch)
        if fwd is None:
            fwd = self._build_forward(batch)
            self._fwd_cache[batch] = fwd
        return fwd(x, *self.params)


# --------------------------------------------------------------------------- #
# Init + pure-JAX reference
# --------------------------------------------------------------------------- #
def init_mlp_params(key, input_dim, output_dim, hidden_size, hidden_layers):
    """Deterministic PyTorch-style init: U(-1/sqrt(fan_in), 1/sqrt(fan_in))."""
    dims = [input_dim] + [hidden_size] * (hidden_layers + 1) + [output_dim]
    weights, biases = [], []
    for i in range(len(dims) - 1):
        fan_in, fan_out = dims[i], dims[i + 1]
        key, wk, bk = jax.random.split(key, 3)
        bound = 1.0 / jnp.sqrt(fan_in)
        # stored as [in, out] (transposed relative to PyTorch's [out, in])
        w = jax.random.uniform(wk, (fan_in, fan_out), jnp.float32, -bound, bound)
        b = jax.random.uniform(bk, (1, fan_out), jnp.float32, -bound, bound)
        weights.append(w)
        biases.append(b)
    return weights, biases


def mlp_reference(x, weights, biases):
    """Pure-JAX fp32 reference for correctness checking."""
    h = x
    for i, (w, b) in enumerate(zip(weights, biases)):
        h = jnp.dot(h, w, precision=jax.lax.Precision.HIGHEST) + \
            jnp.asarray(b).reshape(1, -1)
        if i < len(weights) - 1:
            h = jnp.maximum(h, 0.0)
    return h


if __name__ == "__main__":
    # Small config consistent with the module's constructor signature.
    input_dim, output_dim = 4, 2
    hidden_size, hidden_layers = 32, 2
    batch = 16

    key = jax.random.PRNGKey(0)
    key, xk = jax.random.split(key)
    x = jax.random.normal(xk, (batch, input_dim), jnp.float32)
    weights, biases = init_mlp_params(key, input_dim, output_dim,
                                      hidden_size, hidden_layers)

    ref = mlp_reference(x, weights, biases)

    # 1) fast inference path: bf16 weights / activations / output, f32 accumulation
    mlp_fast = PallasMLP(weights, biases, param_dtype=jnp.bfloat16)
    out_fast = jax.block_until_ready(mlp_fast(x))
    assert out_fast.shape == (batch, output_dim)
    err_fast = float(jnp.max(jnp.abs(out_fast.astype(jnp.float32) - ref)))
    assert jnp.allclose(out_fast.astype(jnp.float32), ref, atol=5e-2, rtol=5e-2), \
        f"bf16 path mismatch vs reference (max abs err {err_fast})"

    # 2) fp32 parity path (what a PyTorch-parity test should use)
    mlp_f32 = PallasMLP(weights, biases, param_dtype=jnp.float32,
                        out_dtype=jnp.float32)
    out_f32 = jax.block_until_ready(mlp_f32(x))
    err_f32 = float(jnp.max(jnp.abs(out_f32 - ref)))
    assert jnp.allclose(out_f32, ref, atol=5e-3, rtol=5e-3), \
        f"f32 path mismatch vs reference (max abs err {err_f32})"

    print("KERNEL_OK")
</pallas_src>

<mosaic_0001>
module attributes {stable_mosaic.version = 11 : i64} {
  func.func @_mlp_kernel(%arg0: i32, %arg1: memref<16x128xbf16, #tpu.memory_space<vmem>>, %arg2: memref<128x128xbf16, #tpu.memory_space<vmem>>, %arg3: memref<1x128xf32, #tpu.memory_space<vmem>>, %arg4: memref<128x128xbf16, #tpu.memory_space<vmem>>, %arg5: memref<1x128xf32, #tpu.memory_space<vmem>>, %arg6: memref<128x128xbf16, #tpu.memory_space<vmem>>, %arg7: memref<1x128xf32, #tpu.memory_space<vmem>>, %arg8: memref<128x128xbf16, #tpu.memory_space<vmem>>, %arg9: memref<1x128xf32, #tpu.memory_space<vmem>>, %arg10: memref<16x128xbf16, #tpu.memory_space<vmem>>) attributes {dimension_semantics = [#tpu.dimension_semantics<parallel>], iteration_bounds = array<i64: 1>, scalar_prefetch = 0 : i64, scratch_operands = 0 : i64, tpu.core_type = #tpu.core_type<tc>, window_params = [{transform_indices = @transform_0, window_bounds = array<i64: 16, 128>}, {pipeline_mode = #tpu.pipeline_mode<synchronous>, transform_indices = @transform_1, window_bounds = array<i64: 128, 128>}, {pipeline_mode = #tpu.pipeline_mode<synchronous>, transform_indices = @transform_2, window_bounds = array<i64: 1, 128>}, {pipeline_mode = #tpu.pipeline_mode<synchronous>, transform_indices = @transform_3, window_bounds = array<i64: 128, 128>}, {pipeline_mode = #tpu.pipeline_mode<synchronous>, transform_indices = @transform_4, window_bounds = array<i64: 1, 128>}, {pipeline_mode = #tpu.pipeline_mode<synchronous>, transform_indices = @transform_5, window_bounds = array<i64: 128, 128>}, {pipeline_mode = #tpu.pipeline_mode<synchronous>, transform_indices = @transform_6, window_bounds = array<i64: 1, 128>}, {pipeline_mode = #tpu.pipeline_mode<synchronous>, transform_indices = @transform_7, window_bounds = array<i64: 128, 128>}, {pipeline_mode = #tpu.pipeline_mode<synchronous>, transform_indices = @transform_8, window_bounds = array<i64: 1, 128>}, {transform_indices = @transform_9, window_bounds = array<i64: 16, 128>}]} {
    %c0 = arith.constant 0 : index
    %c0_0 = arith.constant 0 : index
    %0 = vector.load %arg1[%c0, %c0_0] : memref<16x128xbf16, #tpu.memory_space<vmem>>, vector<16x128xbf16>
    %c0_1 = arith.constant 0 : index
    %c0_2 = arith.constant 0 : index
    %1 = vector.load %arg2[%c0_1, %c0_2] : memref<128x128xbf16, #tpu.memory_space<vmem>>, vector<128x128xbf16>
    %c0_3 = arith.constant 0 : index
    %c0_4 = arith.constant 0 : index
    %2 = vector.load %arg3[%c0_3, %c0_4] : memref<1x128xf32, #tpu.memory_space<vmem>>, vector<1x128xf32>
    %cst = arith.constant dense<0.000000e+00> : vector<16x128xf32>
    %3 = tpu.matmul %0, %1, %cst {dimension_numbers = #tpu.dot_dimension_numbers<[1], [0], [0], [1], [0, 0, 1, 1], [], []>} : vector<16x128xbf16>, vector<128x128xbf16>, vector<16x128xf32> -> vector<16x128xf32>
    %4 = vector.broadcast %2 : vector<1x128xf32> to vector<16x128xf32>
    %5 = arith.addf %3, %4 : vector<16x128xf32>
    %cst_5 = arith.constant 0.000000e+00 : f32
    %6 = vector.broadcast %cst_5 : f32 to vector<16x128xf32>
    %7 = arith.maximumf %5, %6 : vector<16x128xf32>
    %8 = arith.truncf %7 : vector<16x128xf32> to vector<16x128xbf16>
    %c0_6 = arith.constant 0 : index
    %c0_7 = arith.constant 0 : index
    %9 = vector.load %arg4[%c0_6, %c0_7] : memref<128x128xbf16, #tpu.memory_space<vmem>>, vector<128x128xbf16>
    %c0_8 = arith.constant 0 : index
    %c0_9 = arith.constant 0 : index
    %10 = vector.load %arg5[%c0_8, %c0_9] : memref<1x128xf32, #tpu.memory_space<vmem>>, vector<1x128xf32>
    %cst_10 = arith.constant dense<0.000000e+00> : vector<16x128xf32>
    %11 = tpu.matmul %8, %9, %cst_10 {dimension_numbers = #tpu.dot_dimension_numbers<[1], [0], [0], [1], [0, 0, 1, 1], [], []>} : vector<16x128xbf16>, vector<128x128xbf16>, vector<16x128xf32> -> vector<16x128xf32>
    %12 = vector.broadcast %10 : vector<1x128xf32> to vector<16x128xf32>
    %13 = arith.addf %11, %12 : vector<16x128xf32>
    %cst_11 = arith.constant 0.000000e+00 : f32
    %14 = vector.broadcast %cst_11 : f32 to vector<16x128xf32>
    %15 = arith.maximumf %13, %14 : vector<16x128xf32>
    %16 = arith.truncf %15 : vector<16x128xf32> to vector<16x128xbf16>
    %c0_12 = arith.constant 0 : index
    %c0_13 = arith.constant 0 : index
    %17 = vector.load %arg6[%c0_12, %c0_13] : memref<128x128xbf16, #tpu.memory_space<vmem>>, vector<128x128xbf16>
    %c0_14 = arith.constant 0 : index
    %c0_15 = arith.constant 0 : index
    %18 = vector.load %arg7[%c0_14, %c0_15] : memref<1x128xf32, #tpu.memory_space<vmem>>, vector<1x128xf32>
    %cst_16 = arith.constant dense<0.000000e+00> : vector<16x128xf32>
    %19 = tpu.matmul %16, %17, %cst_16 {dimension_numbers = #tpu.dot_dimension_numbers<[1], [0], [0], [1], [0, 0, 1, 1], [], []>} : vector<16x128xbf16>, vector<128x128xbf16>, vector<16x128xf32> -> vector<16x128xf32>
    %20 = vector.broadcast %18 : vector<1x128xf32> to vector<16x128xf32>
    %21 = arith.addf %19, %20 : vector<16x128xf32>
    %cst_17 = arith.constant 0.000000e+00 : f32
    %22 = vector.broadcast %cst_17 : f32 to vector<16x128xf32>
    %23 = arith.maximumf %21, %22 : vector<16x128xf32>
    %24 = arith.truncf %23 : vector<16x128xf32> to vector<16x128xbf16>
    %c0_18 = arith.constant 0 : index
    %c0_19 = arith.constant 0 : index
    %25 = vector.load %arg8[%c0_18, %c0_19] : memref<128x128xbf16, #tpu.memory_space<vmem>>, vector<128x128xbf16>
    %c0_20 = arith.constant 0 : index
    %c0_21 = arith.constant 0 : index
    %26 = vector.load %arg9[%c0_20, %c0_21] : memref<1x128xf32, #tpu.memory_space<vmem>>, vector<1x128xf32>
    %cst_22 = arith.constant dense<0.000000e+00> : vector<16x128xf32>
    %27 = tpu.matmul %24, %25, %cst_22 {dimension_numbers = #tpu.dot_dimension_numbers<[1], [0], [0], [1], [0, 0, 1, 1], [], []>} : vector<16x128xbf16>, vector<128x128xbf16>, vector<16x128xf32> -> vector<16x128xf32>
    %28 = vector.broadcast %26 : vector<1x128xf32> to vector<16x128xf32>
    %29 = arith.addf %27, %28 : vector<16x128xf32>
    %30 = arith.truncf %29 : vector<16x128xf32> to vector<16x128xbf16>
    %c0_23 = arith.constant 0 : index
    %c0_24 = arith.constant 0 : index
    %31 = vector.load %arg10[%c0_23, %c0_24] : memref<16x128xbf16, #tpu.memory_space<vmem>>, vector<16x128xbf16>
    tpu.vector_store %arg10[%c0_23, %c0_24], %30 {strides = array<i32>} : memref<16x128xbf16, #tpu.memory_space<vmem>>, vector<16x128xbf16>,
    return
  }
  func.func @transform_0(%arg0: i32) -> (i32, i32) {
    %c0_i32 = arith.constant 0 : i32
    %c0_i32_0 = arith.constant 0 : i32
    return %arg0, %c0_i32 : i32, i32
  }
  func.func @transform_1(%arg0: i32) -> (i32, i32) {
    %c0_i32 = arith.constant 0 : i32
    %c0_i32_0 = arith.constant 0 : i32
    %c0_i32_1 = arith.constant 0 : i32
    return %c0_i32, %c0_i32_0 : i32, i32
  }
  func.func @transform_2(%arg0: i32) -> (i32, i32) {
    %c0_i32 = arith.constant 0 : i32
    %c0_i32_0 = arith.constant 0 : i32
    %c0_i32_1 = arith.constant 0 : i32
    return %c0_i32, %c0_i32_0 : i32, i32
  }
  func.func @transform_3(%arg0: i32) -> (i32, i32) {
    %c0_i32 = arith.constant 0 : i32
    %c0_i32_0 = arith.constant 0 : i32
    %c0_i32_1 = arith.constant 0 : i32
    return %c0_i32, %c0_i32_0 : i32, i32
  }
  func.func @transform_4(%arg0: i32) -> (i32, i32) {
    %c0_i32 = arith.constant 0 : i32
    %c0_i32_0 = arith.constant 0 : i32
    %c0_i32_1 = arith.constant 0 : i32
    return %c0_i32, %c0_i32_0 : i32, i32
  }
  func.func @transform_5(%arg0: i32) -> (i32, i32) {
    %c0_i32 = arith.constant 0 : i32
    %c0_i32_0 = arith.constant 0 : i32
    %c0_i32_1 = arith.constant 0 : i32
    return %c0_i32, %c0_i32_0 : i32, i32
  }
  func.func @transform_6(%arg0: i32) -> (i32, i32) {
    %c0_i32 = arith.constant 0 : i32
    %c0_i32_0 = arith.constant 0 : i32
    %c0_i32_1 = arith.constant 0 : i32
    return %c0_i32, %c0_i32_0 : i32, i32
  }
  func.func @transform_7(%arg0: i32) -> (i32, i32) {
    %c0_i32 = arith.constant 0 : i32
    %c0_i32_0 = arith.constant 0 : i32
    %c0_i32_1 = arith.constant 0 : i32
    return %c0_i32, %c0_i32_0 : i32, i32
  }
  func.func @transform_8(%arg0: i32) -> (i32, i32) {
    %c0_i32 = arith.constant 0 : i32
    %c0_i32_0 = arith.constant 0 : i32
    %c0_i32_1 = arith.constant 0 : i32
    return %c0_i32, %c0_i32_0 : i32, i32
  }
  func.func @transform_9(%arg0: i32) -> (i32, i32) {
    %c0_i32 = arith.constant 0 : i32
    %c0_i32_0 = arith.constant 0 : i32
    return %arg0, %c0_i32 : i32, i32
  }
}

</mosaic_0001>

<bundles_post_ra>
// kernel: fwd.1
= control target key start
LH: loop header
LB: loop body
LE: loop exit
PB: predicated region body
PF: predicated region fallthrough
CT: control target
= control target key end

     0   :  { %14 = vsyncpa [#allocation3], 0  ;;  %s999_s0 = inlined_call_operand.vmem [shape: bf16[16,128], index: 0, kind: input, shape index: {}]   ;;  %s1000_s1 = inlined_call_operand.hbm [shape: bf16[128,128], index: 1, kind: input, shape index: {}]   ;;  %s1001_s2 = inlined_call_operand.vmem [shape: f32[1,128], index: 2, kind: input, shape index: {}]   ;;  %s1002_s3 = inlined_call_operand.hbm [shape: bf16[128,128], index: 3, kind: input, shape index: {}]   ;;  %s1003_s4 = inlined_call_operand.vmem [shape: f32[1,128], index: 4, kind: input, shape index: {}]   ;;  %s1004_s5 = inlined_call_operand.hbm [shape: bf16[128,128], index: 5, kind: input, shape index: {}]   ;;  %s1005_s6 = inlined_call_operand.vmem [shape: f32[1,128], index: 6, kind: input, shape index: {}]   ;;  %s1006_s7 = inlined_call_operand.hbm [shape: bf16[128,128], index: 7, kind: input, shape index: {}]   ;;  %s1007_s8 = inlined_call_operand.vmem [shape: f32[1,128], index: 8, kind: input, shape index: {}]   ;;  %s1008_s9 = inlined_call_operand.vmem [shape: bf16[16,128], index: 9, kind: output, shape index: {}]  }
   0x1   :  { %15 = vsyncpa [#allocation5], 0 }
   0x2   :  { %16 = vsyncpa [#allocation8], 0  ;;  %s859_s30 = smov [#allocation4]   ;;  %s860_s11 = smov [#allocation2]  }
   0x3   :  { %s38_s10 = sshll.u32 %s859_s30, 4  ;;  %s24_s12 = sshll.u32 %s860_s11, 4  ;;  %s39_s10 = int_to_ptr.vmem [resolvable:$true] %s38_s10  ;;  %s25_s12 = int_to_ptr.vmem [resolvable:$true] %s24_s12 }
   0x4   :  { %s781_s13 = scalar_lea.vmem %s39_s10, 1024  ;;  %p786_p1 = scmp.lt.s32.totalorder %s39_s10, %s39_s10 }
   0x5   :  { %p782_p0 = scmp.ne.s32.totalorder %s39_s10, %s781_s13  ;;  %p787_p2 = scmp.lt.s32.totalorder %s781_s13, %s781_s13 }
   0x7   :  { %p788_p3 = por %p787_p2, %p786_p1 }
   0x9   :  { %p789_p4 = pnand %p788_p3, %p782_p0 }
   0xb   :  { %792 = shalt.err (!%p789_p4)
}
   0xc   :  { %s861_s14 = smov 64   ;;  %s862_s15 = smov 4  }
   0xd   :  { %44 = dma.hbm_to_vmem [thread:$0]  %s1002_s3, 1024, %s39_s10, [#allocation5], %s861_s14, %s861_s14, %s862_s15  }
   0xe   :  { %s801_s18 = scalar_lea.vmem %s25_s12, 1024  ;;  %p806_p6 = scmp.lt.s32.totalorder %s25_s12, %s25_s12 }
   0xf   :  { %p802_p5 = scmp.ne.s32.totalorder %s25_s12, %s801_s18  ;;  %p807_p7 = scmp.lt.s32.totalorder %s801_s18, %s801_s18 }
  0x11   :  { %p808_p8 = por %p807_p7, %p806_p6 }
  0x13   :  { %p809_p9 = pnand %p808_p8, %p802_p5 }
  0x15   :  { %812 = shalt.err (!%p809_p9)
}
  0x16   :  { %30 = dma.hbm_to_vmem [thread:$0]  %s1000_s1, 1024, %s25_s12, [#allocation3], %s861_s14, %s861_s14, %s862_s15  }
  0x17   :  { %s863_s21 = smov [#allocation6]   ;;  %s864_s23 = smov [#allocation7]  }
  0x18   :  { %s52_s22 = sshll.u32 %s863_s21, 4  ;;  %s66_s24 = sshll.u32 %s864_s23, 4  ;;  %s53_s22 = int_to_ptr.vmem [resolvable:$true] %s52_s22  ;;  %s67_s24 = int_to_ptr.vmem [resolvable:$true] %s66_s24 }
  0x19   :  { %s821_s3 = scalar_lea.vmem %s53_s22, 1024  ;;  %p826_p11 = scmp.lt.s32.totalorder %s53_s22, %s53_s22 }
  0x1a   :  { %p822_p10 = scmp.ne.s32.totalorder %s53_s22, %s821_s3  ;;  %p827_p12 = scmp.lt.s32.totalorder %s821_s3, %s821_s3 }
  0x1c   :  { %p828_p13 = por %p827_p12, %p826_p11 }
  0x1e   :  { %p829_p0 = pnand %p828_p13, %p822_p10 }
  0x20   :  { %832 = shalt.err (!%p829_p0)
}
  0x21   :  { %58 = dma.hbm_to_vmem [thread:$0]  %s1004_s5, 1024, %s53_s22, [#allocation5], %s861_s14, %s861_s14, %s862_s15  }
  0x22   :  { %s841_s1 = scalar_lea.vmem %s67_s24, 1024  ;;  %p846_p2 = scmp.lt.s32.totalorder %s67_s24, %s67_s24 }
  0x23   :  { %p842_p1 = scmp.ne.s32.totalorder %s67_s24, %s841_s1  ;;  %p847_p3 = scmp.lt.s32.totalorder %s841_s1, %s841_s1 }
  0x25   :  { %p848_p4 = por %p847_p3, %p846_p2 }
  0x27   :  { %p849_p5 = pnand %p848_p4, %p842_p1 }
  0x29   :  { %852 = shalt.err (!%p849_p5)
}
  0x2a   :  { %72 = dma.hbm_to_vmem [thread:$0]  %s1006_s7, 1024, %s67_s24, [#allocation8], %s861_s14, %s861_s14, %s862_s15  }
  0x2b   :  { %853 = dma.done.wait [#allocation3], 1024  }
  0x2c   :  { %854 = vsyncadd [#allocation3], 4294966272 }
  0x2d   :  { %855 = dma.done.wait [#allocation5], 2048  }
  0x2e   :  { %856 = vsyncadd [#allocation5], 4294965248 }
  0x2f   :  { %857 = dma.done.wait [#allocation8], 1024  }
  0x30   :  { %858 = vsyncadd [#allocation8], 4294966272  ;;  %v865_v0 = vmov 0.0   ;;  %vm866_vm0 = vmmov 0   ;;  %v740_v1 = vld [vmem:[#allocation2 + $0x38] sm:$0xff]   ;;  %v741_v2 = vld [vmem:[#allocation2 + $0x30] sm:$0xff]  }
  0x31   :  { %652 = vmatprep.subr.bf16.mxu0 %v865_v0  ;;  %668 = vmatprep.mubr.msk.bf16.mxu0 %vm866_vm0, %v865_v0  ;;  %v742_v3 = vld [vmem:[#allocation2 + $0x28] sm:$0xff]   ;;  %v749_v4 = vld [vmem:[#allocation4 + $0x38] sm:$0xff]   ;;  %v743_v5 = vld [vmem:[#allocation2 + $0x20] sm:$0xff]  }
  0x32   :  { %672 = vmatprep.subr.bf16.mxu1 %v865_v0  ;;  %688 = vmatprep.mubr.msk.bf16.mxu1 %vm866_vm0, %v865_v0  ;;  %v750_v6 = vld [vmem:[#allocation4 + $0x30] sm:$0xff]   ;;  %v744_v7 = vld [vmem:[#allocation2 + $0x18] sm:$0xff]   ;;  %v751_v8 = vld [vmem:[#allocation4 + $0x28] sm:$0xff]  }
  0x33   :  { %653 = vmatpush3.bf16.msra.mxu0 %v740_v1  ;;  %673 = vmatpush3.bf16.msra.mxu1 %v749_v4  ;;  %v745_v9 = vld [vmem:[#allocation2 + $0x10] sm:$0xff]   ;;  %v752_v10 = vld [vmem:[#allocation4 + $0x20] sm:$0xff]   ;;  %v746_v11 = vld [vmem:[#allocation2 + $0x8] sm:$0xff]  }
  0x34   :  { %654 = vmatprep.subr.bf16.mxu0 %v865_v0  ;;  %674 = vmatprep.subr.bf16.mxu1 %v865_v0  ;;  %v753_v12 = vld [vmem:[#allocation4 + $0x18] sm:$0xff]   ;;  %v747_v13 = vld [vmem:[#allocation2] sm:$0xff]   ;;  %v754_v15 = vld [vmem:[#allocation4 + $0x10] sm:$0xff]  }
  0x35   :  { %v748_v14 = vld [vmem:[%s999_s0] sm:$0xff]   ;;  %v755_v16 = vld [vmem:[#allocation4 + $0x8] sm:$0xff]   ;;  %v757_v18 = vld [vmem:[#allocation6 + $0x38] sm:$0xff]  }
  0x36   :  { %v756_v17 = vld [vmem:[#allocation4] sm:$0xff]   ;;  %v758_v19 = vld [vmem:[#allocation6 + $0x30] sm:$0xff]   ;;  %v759_v20 = vld [vmem:[#allocation6 + $0x28] sm:$0xff]  }
  0x37   :  { %655 = vmatpush3.bf16.msra.mxu0 %v741_v2  ;;  %675 = vmatpush3.bf16.msra.mxu1 %v750_v6  ;;  %v760_v21 = vld [vmem:[#allocation6 + $0x20] sm:$0xff]   ;;  %v761_v22 = vld [vmem:[#allocation6 + $0x18] sm:$0xff]   ;;  %v762_v33 = vld [vmem:[#allocation6 + $0x10] sm:$0xff]  }
  0x38   :  { %656 = vmatprep.subr.bf16.mxu0 %v865_v0  ;;  %676 = vmatprep.subr.bf16.mxu1 %v865_v0  ;;  %v570_v23 = vld [vmem:[%s1001_s2] ss:$0 sm:$0xff]  ;;  %v763_v34 = vld [vmem:[#allocation6 + $0x8] sm:$0xff]   ;;  %v765_v36 = vld [vmem:[#allocation7 + $0x38] sm:$0xff]  }
  0x39   :  { %v764_v35 = vld [vmem:[#allocation6] sm:$0xff]   ;;  %v766_v37 = vld [vmem:[#allocation7 + $0x30] sm:$0xff]   ;;  %v767_v38 = vld [vmem:[#allocation7 + $0x28] sm:$0xff]  }
  0x3a   :  { %v768_v39 = vld [vmem:[#allocation7 + $0x20] sm:$0xff]   ;;  %v769_v40 = vld [vmem:[#allocation7 + $0x18] sm:$0xff]   ;;  %v770_v51 = vld [vmem:[#allocation7 + $0x10] sm:$0xff]  }
  0x3b   :  { %657 = vmatpush3.bf16.msra.mxu0 %v742_v3  ;;  %677 = vmatpush3.bf16.msra.mxu1 %v751_v8  ;;  %v580_v41 = vld [vmem:[%s1003_s4] ss:$0 sm:$0xff]  ;;  %v771_v52 = vld [vmem:[#allocation7 + $0x8] sm:$0xff]  }
  0x3c   :  { %658 = vmatprep.subr.bf16.mxu0 %v865_v0  ;;  %678 = vmatprep.subr.bf16.mxu1 %v865_v0  ;;  %v772_v53 = vld [vmem:[#allocation7] sm:$0xff]  }
  0x3d   :  { %v589_v54 = vld [vmem:[%s1005_s6] ss:$0 sm:$0xff] }
  0x3f   :  { %659 = vmatpush3.bf16.msra.mxu0 %v743_v5  ;;  %679 = vmatpush3.bf16.msra.mxu1 %v752_v10 }
  0x40   :  { %660 = vmatprep.subr.bf16.mxu0 %v865_v0  ;;  %680 = vmatprep.subr.bf16.mxu1 %v865_v0 }
  0x43   :  { %661 = vmatpush3.bf16.msra.mxu0 %v744_v7  ;;  %681 = vmatpush3.bf16.msra.mxu1 %v753_v12 }
  0x44   :  { %662 = vmatprep.subr.bf16.mxu0 %v865_v0  ;;  %682 = vmatprep.subr.bf16.mxu1 %v865_v0 }
  0x47   :  { %663 = vmatpush3.bf16.msra.mxu0 %v745_v9  ;;  %683 = vmatpush3.bf16.msra.mxu1 %v754_v15 }
  0x48   :  { %664 = vmatprep.subr.bf16.mxu0 %v865_v0  ;;  %684 = vmatprep.subr.bf16.mxu1 %v865_v0 }
  0x4b   :  { %665 = vmatpush3.bf16.msra.mxu0 %v746_v11  ;;  %685 = vmatpush3.bf16.msra.mxu1 %v755_v16 }
  0x4c   :  { %666 = vmatprep.subr.bf16.mxu0 %v865_v0  ;;  %686 = vmatprep.subr.bf16.mxu1 %v865_v0 }
  0x4f   :  { %667 = vmatpush3.bf16.msra.mxu0 %v747_v13  ;;  %687 = vmatpush3.bf16.msra.mxu1 %v756_v17 }
  0x50   :  { %692 = vmatprep.subr.bf16.mxu0 %v865_v0  ;;  %712 = vmatprep.subr.bf16.mxu1 %v865_v0 }
  0x52   :  { %669 = vmatmul.mubr.bf16.vlgmr.msra.gmra.mxu0 %v748_v14 }
  0x53   :  { %708 = vmatprep.mubr.msk.bf16.mxu0 %vm866_vm0, %v865_v0  ;;  %693 = vmatpush3.bf16.msra.mxu0 %v757_v18 }
  0x54   :  { %694 = vmatprep.subr.bf16.mxu0 %v865_v0 }
  0x57   :  { %695 = vmatpush3.bf16.msra.mxu0 %v758_v19 }
  0x58   :  { %696 = vmatprep.subr.bf16.mxu0 %v865_v0 }
  0x5b   :  { %697 = vmatpush3.bf16.msra.mxu0 %v759_v20 }
  0x5c   :  { %698 = vmatprep.subr.bf16.mxu0 %v865_v0 }
  0x5f   :  { %699 = vmatpush3.bf16.msra.mxu0 %v760_v21 }
  0x60   :  { %700 = vmatprep.subr.bf16.mxu0 %v865_v0 }
  0x63   :  { %701 = vmatpush3.bf16.msra.mxu0 %v761_v22 }
  0x64   :  { %702 = vmatprep.subr.bf16.mxu0 %v865_v0 }
  0x67   :  { %703 = vmatpush3.bf16.msra.mxu0 %v762_v33 }
  0x68   :  { %704 = vmatprep.subr.bf16.mxu0 %v865_v0 }
  0x6b   :  { %705 = vmatpush3.bf16.msra.mxu0 %v763_v34 }
  0x6c   :  { %706 = vmatprep.subr.bf16.mxu0 %v865_v0 }
  0x6f   :  { %707 = vmatpush3.bf16.msra.mxu0 %v764_v35 }
 0x112   :  { %v201_v24 = vpop.f32.mrf.mxu0 }
 0x113   :  { %v202_v26 = vadd.f32 %v570_v23, %v201_v24 }
 0x114   :  { %v670_v25 = vpop.f32.mrf.mxu0 }
 0x115   :  { %v208_v30 = vmax.f32 %v202_v26, 0.0 }
 0x116   :  { %v204_v27 = vpop.f32.mrf.mxu0 }
 0x117   :  { %v205_v28 = vadd.f32 %v570_v23, %v204_v27 }
 0x118   :  { %v671_v29 = vpop.f32.mrf.mxu0 }
 0x119   :  { %v209_v31 = vmax.f32 %v205_v28, 0.0 }
 0x11b   :  { %v210_v32 = vpack.c.bf16 %v209_v31, %v208_v30 }
 0x11d   :  { %689 = vmatmul.mubr.bf16.vlgmr.msra.gmra.mxu1 %v210_v32 }
 0x11e   :  { %728 = vmatprep.mubr.msk.bf16.mxu1 %vm866_vm0, %v865_v0  ;;  %713 = vmatpush3.bf16.msra.mxu1 %v765_v36 }
 0x11f   :  { %714 = vmatprep.subr.bf16.mxu1 %v865_v0 }
 0x122   :  { %715 = vmatpush3.bf16.msra.mxu1 %v766_v37 }
 0x123   :  { %716 = vmatprep.subr.bf16.mxu1 %v865_v0 }
 0x126   :  { %717 = vmatpush3.bf16.msra.mxu1 %v767_v38 }
 0x127   :  { %718 = vmatprep.subr.bf16.mxu1 %v865_v0 }
 0x12a   :  { %719 = vmatpush3.bf16.msra.mxu1 %v768_v39 }
 0x12b   :  { %720 = vmatprep.subr.bf16.mxu1 %v865_v0 }
 0x12e   :  { %721 = vmatpush3.bf16.msra.mxu1 %v769_v40 }
 0x12f   :  { %722 = vmatprep.subr.bf16.mxu1 %v865_v0 }
 0x132   :  { %723 = vmatpush3.bf16.msra.mxu1 %v770_v51 }
 0x133   :  { %724 = vmatprep.subr.bf16.mxu1 %v865_v0 }
 0x136   :  { %725 = vmatpush3.bf16.msra.mxu1 %v771_v52 }
 0x137   :  { %726 = vmatprep.subr.bf16.mxu1 %v865_v0  ;;  %v598_v0 = vld [vmem:[%s1007_s8] ss:$0 sm:$0xff] }
 0x13a   :  { %727 = vmatpush3.bf16.msra.mxu1 %v772_v53 }
 0x1dd   :  { %v316_v42 = vpop.f32.mrf.mxu1 }
 0x1de   :  { %v317_v44 = vadd.f32 %v580_v41, %v316_v42 }
 0x1df   :  { %v690_v43 = vpop.f32.mrf.mxu1 }
 0x1e0   :  { %v323_v48 = vmax.f32 %v317_v44, 0.0 }
 0x1e1   :  { %v319_v45 = vpop.f32.mrf.mxu1 }
 0x1e2   :  { %v320_v46 = vadd.f32 %v580_v41, %v319_v45 }
 0x1e3   :  { %v691_v47 = vpop.f32.mrf.mxu1 }
 0x1e4   :  { %v324_v49 = vmax.f32 %v320_v46, 0.0 }
 0x1e6   :  { %v325_v50 = vpack.c.bf16 %v324_v49, %v323_v48 }
 0x1e8   :  { %709 = vmatmul.mubr.bf16.vlgmr.msra.gmra.mxu0 %v325_v50 }
 0x2a8   :  { %v431_v55 = vpop.f32.mrf.mxu0 }
 0x2a9   :  { %v432_v57 = vadd.f32 %v589_v54, %v431_v55 }
 0x2aa   :  { %v710_v56 = vpop.f32.mrf.mxu0 }
 0x2ab   :  { %v438_v61 = vmax.f32 %v432_v57, 0.0 }
 0x2ac   :  { %v434_v58 = vpop.f32.mrf.mxu0 }
 0x2ad   :  { %v435_v59 = vadd.f32 %v589_v54, %v434_v58 }
 0x2ae   :  { %v711_v60 = vpop.f32.mrf.mxu0 }
 0x2af   :  { %v439_v62 = vmax.f32 %v435_v59, 0.0 }
 0x2b1   :  { %v440_v63 = vpack.c.bf16 %v439_v62, %v438_v61 }
 0x2b3   :  { %729 = vmatmul.mubr.bf16.vlgmr.msra.gmra.mxu1 %v440_v63 }
 0x373   :  { %v546_v1 = vpop.f32.mrf.mxu1 }
 0x374   :  { %v547_v4 = vadd.f32 %v598_v0, %v546_v1 }
 0x375   :  { %v730_v2 = vpop.f32.mrf.mxu1 }
 0x377   :  { %v549_v3 = vpop.f32.mrf.mxu1 }
 0x378   :  { %v550_v5 = vadd.f32 %v598_v0, %v549_v3 }
 0x379   :  { %v731_v6 = vpop.f32.mrf.mxu1 }
 0x37a   :  { %v614_v7 = vpack.c.bf16 %v550_v5, %v547_v4 }
 0x37c   :  { %615 = vst [vmem:[%s1008_s9] sm:$0xff] %v614_v7  }
 0x37d   :  { %567 = vsyncpa [#allocation3], 1 }
 0x37e   :  { %568 = vsyncpa [#allocation5], 1 }
 0x37f   :  { %569 = vsyncpa [#allocation8], 1 }

</bundles_post_ra>
